<compile_context>
chip_gen: v6e
topology: v6e:2x2x1
jax: 0.10.0
libtpu: 0.0.40
codegen_flags: <defaults>
</compile_context>

<pallas_src>
import functools

import numpy as np
import jax
import jax.numpy as jnp
from jax.experimental import pallas as pl
from jax.experimental.pallas import tpu as pltpu

_EPS = 1e-5
_LANE = 128   # lane width (last-dim / MXU N / K padding)
_SUB = 16     # row-tile granularity (bf16 sublane packing friendly)


def _round_up(x, m):
    return ((x + m - 1) // m) * m


# ---------------------------------------------------------------------------
# Pallas kernels
# ---------------------------------------------------------------------------

def _conv_stats_kernel(p_ref, w_ref, c_ref, st_ref):
    """Tiled GEMM (tm,K)x(K,Cp) -> bf16 conv tile; f32 per-channel sum/sumsq
    accumulated across the 'arbitrary' M axis into this core-half's resident
    (8,Cp) stats slice (rows 0/1; rows 2..7 unused)."""
    i = pl.program_id(1)
    c = jnp.dot(p_ref[...], w_ref[...], preferred_element_type=jnp.float32)
    c_ref[...] = c.astype(c_ref.dtype)

    @pl.when(i == 0)
    def _init():
        st_ref[...] = jnp.zeros_like(st_ref)

    cp = c.shape[1]
    # single full-tile accumulate -> no masked sub-row read-modify-writes
    st_ref[...] += jnp.concatenate(
        [jnp.sum(c, axis=0, keepdims=True),
         jnp.sum(c * c, axis=0, keepdims=True),
         jnp.zeros((6, cp), jnp.float32)], axis=0)


def _conv_stats_proj_kernel(p_ref, w_ref, xs_ref, ws_ref,
                            c_ref, cs_ref, st_ref):
    """conv1 GEMM + co-scheduled 1x1 projection-shortcut GEMM + BN statistics
    for both (rows 0/1 = conv1, rows 2/3 = shortcut conv)."""
    i = pl.program_id(1)
    c = jnp.dot(p_ref[...], w_ref[...], preferred_element_type=jnp.float32)
    s = jnp.dot(xs_ref[...], ws_ref[...], preferred_element_type=jnp.float32)
    c_ref[...] = c.astype(c_ref.dtype)
    cs_ref[...] = s.astype(cs_ref.dtype)

    @pl.when(i == 0)
    def _init():
        st_ref[...] = jnp.zeros_like(st_ref)

    cp = c.shape[1]
    st_ref[...] += jnp.concatenate(
        [jnp.sum(c, axis=0, keepdims=True),
         jnp.sum(c * c, axis=0, keepdims=True),
         jnp.sum(s, axis=0, keepdims=True),
         jnp.sum(s * s, axis=0, keepdims=True),
         jnp.zeros((4, cp), jnp.float32)], axis=0)


def _affine_from_stats(sum_row, ssq_row, g, b, inv_m):
    # BN (train mode, biased variance) folded into y = x*scale + shift.
    mean = sum_row * inv_m
    var = jnp.maximum(ssq_row * inv_m - mean * mean, 0.0)
    scale = g * jax.lax.rsqrt(var + _EPS)          # rsqrt -> EUP slot
    shift = b - mean * scale
    return scale, shift


def _bn_relu_kernel(c_ref, st_ref, g_ref, b_ref, o_ref, *, inv_m):
    st = st_ref[0] + st_ref[1]                     # combine the two M-halves
    scale, shift = _affine_from_stats(st[0:1, :], st[1:2, :],
                                      g_ref[...], b_ref[...], inv_m)
    y = c_ref[...].astype(jnp.float32) * scale + shift
    o_ref[...] = jnp.maximum(y, 0.0).astype(o_ref.dtype)


def _bn_add_relu_id_kernel(c_ref, st_ref, g_ref, b_ref, sc_ref, o_ref, *,
                           inv_m):
    """BN2(conv2) + identity shortcut + ReLU."""
    st = st_ref[0] + st_ref[1]
    scale, shift = _affine_from_stats(st[0:1, :], st[1:2, :],
                                      g_ref[...], b_ref[...], inv_m)
    y = (c_ref[...].astype(jnp.float32) * scale + shift
         + sc_ref[...].astype(jnp.float32))
    o_ref[...] = jnp.maximum(y, 0.0).astype(o_ref.dtype)


def _bn_add_relu_proj_kernel(c_ref, st2_ref, g2_ref, b2_ref,
                             cs_ref, st1_ref, gs_ref, bs_ref, o_ref, *, inv_m):
    """BN2(conv2) + BN_s(1x1 shortcut conv) + add + ReLU."""
    st2 = st2_ref[0] + st2_ref[1]
    st1 = st1_ref[0] + st1_ref[1]
    sc2, sh2 = _affine_from_stats(st2[0:1, :], st2[1:2, :],
                                  g2_ref[...], b2_ref[...], inv_m)
    scs, shs = _affine_from_stats(st1[2:3, :], st1[3:4, :],
                                  gs_ref[...], bs_ref[...], inv_m)
    y = (c_ref[...].astype(jnp.float32) * sc2 + sh2
         + cs_ref[...].astype(jnp.float32) * scs + shs)
    o_ref[...] = jnp.maximum(y, 0.0).astype(o_ref.dtype)


# ---------------------------------------------------------------------------
# plain-JAX glue (layout / patch extraction / padding)
# ---------------------------------------------------------------------------

def _im2col(x_padded, kh, kw, stride):
    # x_padded: (N, Hp, Wp, C)  ->  (N*Ho*Wo, kh*kw*C), ordering (kh, kw, C)
    N, Hp, Wp, C = x_padded.shape
    Ho = (Hp - kh) // stride + 1
    Wo = (Wp - kw) // stride + 1
    cols = []
    for di in range(kh):
        for dj in range(kw):
            cols.append(x_padded[:, di:di + Ho * stride:stride,
                                 dj:dj + Wo * stride:stride, :])
    p = jnp.concatenate(cols, axis=-1)
    return p.reshape(N * Ho * Wo, kh * kw * C), Ho, Wo


def _pad2(a, rows, cols):
    r, c = a.shape
    return jnp.pad(a, ((0, rows - r), (0, cols - c)))


# ---------------------------------------------------------------------------
# ResidualBlock forward
# ---------------------------------------------------------------------------

def residual_block(x_nchw, params, stride=1, block_m=512, epi_block_m=2048,
                   out_dtype=jnp.bfloat16):
    """Forward pass of ResidualBlock.  x_nchw: (N, Cin, H, W) float32.
    params: HWIO conv weights w1 (3,3,Cin,Cout), w2 (3,3,Cout,Cout),
            optional ws (1,1,Cin,Cout), plus BN gamma/beta g1,b1,g2,b2(,gs,bs).
    """
    N, Cin, H, W = x_nchw.shape
    Cout = params["w1"].shape[-1]
    Cp = _round_up(Cout, _LANE)                        # lane-dense channels

    x_b = jnp.transpose(x_nchw, (0, 2, 3, 1)).astype(jnp.bfloat16)  # NHWC bf16

    # ---- conv1 patches (im2col) ----
    xp = jnp.pad(x_b, ((0, 0), (1, 1), (1, 1), (0, 0)))
    p1, Ho, Wo = _im2col(xp, 3, 3, stride)
    M = N * Ho * Wo

    # GEMM row tile tm; leading "parallel" axis of size 2 (v7x: one half of M
    # per TensorCore) requires Mp % (2*tm) == 0.  The epilogue row tile tm_e
    # is a larger multiple of 2*tm (pure streaming -> fewer grid steps).
    tm = _round_up(min(block_m, max(-(-M // 2), _SUB)), _SUB)
    tm_e = 2 * tm * max(1, min(epi_block_m // (2 * tm), -(-M // (2 * tm))))
    Mp = _round_up(M, tm_e)
    n_m = Mp // tm              # even by construction
    n_half = n_m // 2
    n_e = Mp // tm_e
    inv_m = 1.0 / float(M)      # BN stats divide by the *real* row count;
                                # zero-padded rows/channels contribute 0.

    K1 = 9 * Cin
    K1p = _round_up(K1, _LANE)  # lane dim of the patch block -> pad to 128
    p1 = _pad2(p1, Mp, K1p)
    w1 = _pad2(params["w1"].reshape(K1, Cout), K1p, Cp).astype(jnp.bfloat16)
    g1 = _pad2(params["g1"].reshape(1, Cout).astype(jnp.float32), 1, Cp)
    b1 = _pad2(params["b1"].reshape(1, Cout).astype(jnp.float32), 1, Cp)

    use_proj = (stride != 1) or (Cin != Cout)

    cp_gemm = pltpu.CompilerParams(
        dimension_semantics=("parallel", "arbitrary"),
        vmem_limit_bytes=32 * 1024 * 1024)
    cp_epi = pltpu.CompilerParams(
        dimension_semantics=("parallel",),
        vmem_limit_bytes=32 * 1024 * 1024)

    conv_shape = jax.ShapeDtypeStruct((Mp, Cp), jnp.bfloat16)    # bf16 interm.
    stats_shape = jax.ShapeDtypeStruct((2, 8, Cp), jnp.float32)  # per-half f32

    # ---- GEMM-pass specs (grid = (2, n_half)) ----
    def row_spec(rows, cols):
        return pl.BlockSpec((rows, cols), lambda h, i: (h * n_half + i, 0))

    def fix_spec(rows, cols):
        return pl.BlockSpec((rows, cols), lambda h, i: (0, 0))

    stats_spec = pl.BlockSpec((None, 8, Cp), lambda h, i: (h, 0, 0))

    # ---- epilogue specs (grid = (n_e,)) ----
    def e_row_spec(cols):
        return pl.BlockSpec((tm_e, cols), lambda i: (i, 0))

    def e_fix_spec(rows, cols):
        return pl.BlockSpec((rows, cols), lambda i: (0, 0))

    e_stats_spec = pl.BlockSpec((2, 8, Cp), lambda i: (0, 0, 0))

    # ---- pass 1a: conv1 GEMM (+ projection shortcut GEMM) + BN statistics ----
    if use_proj:
        Ksp = _round_up(Cin, _LANE)
        xs = x_b[:, ::stride, ::stride, :].reshape(M, Cin)
        xs = _pad2(xs, Mp, Ksp)
        ws = _pad2(params["ws"].reshape(Cin, Cout), Ksp, Cp).astype(jnp.bfloat16)
        gs = _pad2(params["gs"].reshape(1, Cout).astype(jnp.float32), 1, Cp)
        bs = _pad2(params["bs"].reshape(1, Cout).astype(jnp.float32), 1, Cp)

        c1, cs, st1 = pl.pallas_call(
            _conv_stats_proj_kernel,
            grid=(2, n_half),
            in_specs=[row_spec(tm, K1p), fix_spec(K1p, Cp),
                      row_spec(tm, Ksp), fix_spec(Ksp, Cp)],
            out_specs=[row_spec(tm, Cp), row_spec(tm, Cp), stats_spec],
            out_shape=[conv_shape, conv_shape, stats_shape],
            compiler_params=cp_gemm,
        )(p1, w1, xs, ws)
    else:
        c1, st1 = pl.pallas_call(
            _conv_stats_kernel,
            grid=(2, n_half),
            in_specs=[row_spec(tm, K1p), fix_spec(K1p, Cp)],
            out_specs=[row_spec(tm, Cp), stats_spec],
            out_shape=[conv_shape, stats_shape],
            compiler_params=cp_gemm,
        )(p1, w1)

    # ---- pass 1b: BN1 (batch stats) + ReLU, large parallel row tiles ----
    y1 = pl.pallas_call(
        functools.partial(_bn_relu_kernel, inv_m=inv_m),
        grid=(n_e,),
        in_specs=[e_row_spec(Cp), e_stats_spec,
                  e_fix_spec(1, Cp), e_fix_spec(1, Cp)],
        out_specs=e_row_spec(Cp),
        out_shape=jax.ShapeDtypeStruct((Mp, Cp), jnp.bfloat16),
        compiler_params=cp_epi,
    )(c1, st1, g1, b1)

    # ---- conv2 patches (from real rows / real channels only) ----
    y1_img = y1[:M, :Cout].reshape(N, Ho, Wo, Cout)
    y1p = jnp.pad(y1_img, ((0, 0), (1, 1), (1, 1), (0, 0)))
    p2, _, _ = _im2col(y1p, 3, 3, 1)
    K2 = 9 * Cout
    K2p = _round_up(K2, _LANE)
    p2 = _pad2(p2, Mp, K2p)                                   # bf16 already
    w2 = _pad2(params["w2"].reshape(K2, Cout), K2p, Cp).astype(jnp.bfloat16)
    g2 = _pad2(params["g2"].reshape(1, Cout).astype(jnp.float32), 1, Cp)
    b2 = _pad2(params["b2"].reshape(1, Cout).astype(jnp.float32), 1, Cp)

    # ---- pass 2a: conv2 GEMM + BN2 statistics ----
    c2, st2 = pl.pallas_call(
        _conv_stats_kernel,
        grid=(2, n_half),
        in_specs=[row_spec(tm, K2p), fix_spec(K2p, Cp)],
        out_specs=[row_spec(tm, Cp), stats_spec],
        out_shape=[conv_shape, stats_shape],
        compiler_params=cp_gemm,
    )(p2, w2)

    # ---- pass 2b: BN2 + shortcut + add + ReLU epilogue (bf16 out) ----
    if use_proj:
        out = pl.pallas_call(
            functools.partial(_bn_add_relu_proj_kernel, inv_m=inv_m),
            grid=(n_e,),
            in_specs=[e_row_spec(Cp), e_stats_spec,
                      e_fix_spec(1, Cp), e_fix_spec(1, Cp),
                      e_row_spec(Cp), e_stats_spec,
                      e_fix_spec(1, Cp), e_fix_spec(1, Cp)],
            out_specs=e_row_spec(Cp),
            out_shape=jax.ShapeDtypeStruct((Mp, Cp), out_dtype),
            compiler_params=cp_epi,
        )(c2, st2, g2, b2, cs, st1, gs, bs)
    else:
        x_id = _pad2(x_b.reshape(M, Cin), Mp, Cp)    # identity shortcut, bf16
        out = pl.pallas_call(
            functools.partial(_bn_add_relu_id_kernel, inv_m=inv_m),
            grid=(n_e,),
            in_specs=[e_row_spec(Cp), e_stats_spec,
                      e_fix_spec(1, Cp), e_fix_spec(1, Cp),
                      e_row_spec(Cp)],
            out_specs=e_row_spec(Cp),
            out_shape=jax.ShapeDtypeStruct((Mp, Cp), out_dtype),
            compiler_params=cp_epi,
        )(c2, st2, g2, b2, x_id)

    out = out[:M, :Cout].reshape(N, Ho, Wo, Cout)
    return jnp.transpose(out, (0, 3, 1, 2))      # back to NCHW


# ---------------------------------------------------------------------------
# pure-JAX f32 reference (for verification only)
# ---------------------------------------------------------------------------

def _ref_bn(y_nchw, g, b):
    mean = jnp.mean(y_nchw, axis=(0, 2, 3), keepdims=True)
    var = jnp.mean(jnp.square(y_nchw - mean), axis=(0, 2, 3), keepdims=True)
    return ((y_nchw - mean) * jax.lax.rsqrt(var + _EPS)
            * g.reshape(1, -1, 1, 1) + b.reshape(1, -1, 1, 1))


def ref_forward(x_nchw, params, stride=1):
    x = x_nchw.astype(jnp.float32)
    dn = ("NCHW", "HWIO", "NCHW")
    Cin = x.shape[1]
    Cout = params["w1"].shape[-1]
    c1 = jax.lax.conv_general_dilated(x, params["w1"], (stride, stride),
                                      ((1, 1), (1, 1)), dimension_numbers=dn)
    h = jax.nn.relu(_ref_bn(c1, params["g1"], params["b1"]))
    c2 = jax.lax.conv_general_dilated(h, params["w2"], (1, 1),
                                      ((1, 1), (1, 1)), dimension_numbers=dn)
    out = _ref_bn(c2, params["g2"], params["b2"])
    if stride != 1 or Cin != Cout:
        sc = jax.lax.conv_general_dilated(x, params["ws"], (stride, stride),
                                          ((0, 0), (0, 0)),
                                          dimension_numbers=dn)
        sc = _ref_bn(sc, params["gs"], params["bs"])
    else:
        sc = x
    return jax.nn.relu(out + sc)


# ---------------------------------------------------------------------------
# self-test
# ---------------------------------------------------------------------------

def _make_params(key, cin, cout, need_proj):
    ks = jax.random.split(key, 10)
    p = dict(
        w1=0.2 * jax.random.normal(ks[0], (3, 3, cin, cout), jnp.float32),
        g1=1.0 + 0.1 * jax.random.normal(ks[1], (cout,), jnp.float32),
        b1=0.1 * jax.random.normal(ks[2], (cout,), jnp.float32),
        w2=0.2 * jax.random.normal(ks[3], (3, 3, cout, cout), jnp.float32),
        g2=1.0 + 0.1 * jax.random.normal(ks[4], (cout,), jnp.float32),
        b2=0.1 * jax.random.normal(ks[5], (cout,), jnp.float32),
    )
    if need_proj:
        p.update(
            ws=0.2 * jax.random.normal(ks[6], (1, 1, cin, cout), jnp.float32),
            gs=1.0 + 0.1 * jax.random.normal(ks[7], (cout,), jnp.float32),
            bs=0.1 * jax.random.normal(ks[8], (cout,), jnp.float32),
        )
    return p, ks[9]


def _check(x, params, stride, atol, rtol):
    out = jax.block_until_ready(
        residual_block(x, params, stride=stride, block_m=128))
    ref = jax.block_until_ready(ref_forward(x, params, stride=stride))
    np.testing.assert_allclose(np.asarray(out.astype(jnp.float32)),
                               np.asarray(ref), atol=atol, rtol=rtol)


if __name__ == "__main__":
    # bf16 MXU operands + bf16 intermediates (f32 accumulation / BN stats)
    # vs. an f32 reference: tolerance is accordingly looser than pure f32.
    ATOL = RTOL = 5e-2

    # config 1: projection shortcut (Cin != Cout), stride 1, multi-tile grid
    params, kx = _make_params(jax.random.PRNGKey(0), 4, 8, True)
    x = jax.random.normal(kx, (2, 4, 16, 16), jnp.float32)
    _check(x, params, stride=1, atol=ATOL, rtol=RTOL)

    # config 2: identity shortcut, odd spatial size -> exercises the padded
    # (partial) last M tile and the zero-row stats handling
    params, kx = _make_params(jax.random.PRNGKey(1), 8, 8, False)
    x = jax.random.normal(kx, (2, 8, 14, 14), jnp.float32)
    _check(x, params, stride=1, atol=ATOL, rtol=RTOL)

    # config 3: strided (downsampling) projection shortcut
    params, kx = _make_params(jax.random.PRNGKey(2), 8, 8, True)
    x = jax.random.normal(kx, (2, 8, 16, 16), jnp.float32)
    _check(x, params, stride=2, atol=ATOL, rtol=RTOL)

    print("KERNEL_OK")
</pallas_src>

<mosaic_0001>
module attributes {stable_mosaic.version = 11 : i64} {
  func.func @_conv_stats_proj_kernel(%arg0: i32, %arg1: i32, %arg2: memref<128x128xbf16, #tpu.memory_space<vmem>>, %arg3: memref<128x128xbf16, #tpu.memory_space<vmem>>, %arg4: memref<128x128xbf16, #tpu.memory_space<vmem>>, %arg5: memref<128x128xbf16, #tpu.memory_space<vmem>>, %arg6: memref<128x128xbf16, #tpu.memory_space<vmem>>, %arg7: memref<128x128xbf16, #tpu.memory_space<vmem>>, %arg8: memref<1x8x128xf32, #tpu.memory_space<vmem>>) attributes {dimension_semantics = [#tpu.dimension_semantics<parallel>, #tpu.dimension_semantics<arbitrary>], iteration_bounds = array<i64: 2, 2>, scalar_prefetch = 0 : i64, scratch_operands = 0 : i64, tpu.core_type = #tpu.core_type<tc>, window_params = [{transform_indices = @transform_0, window_bounds = array<i64: 128, 128>}, {pipeline_mode = #tpu.pipeline_mode<synchronous>, transform_indices = @transform_1, window_bounds = array<i64: 128, 128>}, {transform_indices = @transform_2, window_bounds = array<i64: 128, 128>}, {pipeline_mode = #tpu.pipeline_mode<synchronous>, transform_indices = @transform_3, window_bounds = array<i64: 128, 128>}, {transform_indices = @transform_4, window_bounds = array<i64: 128, 128>}, {transform_indices = @transform_5, window_bounds = array<i64: 128, 128>}, {transform_indices = @transform_6, window_bounds = array<i64: 1, 8, 128>}]} {
    %c0 = arith.constant 0 : index
    %c0_0 = arith.constant 0 : index
    %0 = vector.load %arg2[%c0, %c0_0] : memref<128x128xbf16, #tpu.memory_space<vmem>>, vector<128x128xbf16>
    %c0_1 = arith.constant 0 : index
    %c0_2 = arith.constant 0 : index
    %1 = vector.load %arg3[%c0_1, %c0_2] : memref<128x128xbf16, #tpu.memory_space<vmem>>, vector<128x128xbf16>
    %cst = arith.constant dense<0.000000e+00> : vector<128x128xf32>
    %2 = tpu.matmul %0, %1, %cst {dimension_numbers = #tpu.dot_dimension_numbers<[1], [0], [0], [1], [0, 0, 1, 1], [], []>} : vector<128x128xbf16>, vector<128x128xbf16>, vector<128x128xf32> -> vector<128x128xf32>
    %c0_3 = arith.constant 0 : index
    %c0_4 = arith.constant 0 : index
    %3 = vector.load %arg4[%c0_3, %c0_4] : memref<128x128xbf16, #tpu.memory_space<vmem>>, vector<128x128xbf16>
    %c0_5 = arith.constant 0 : index
    %c0_6 = arith.constant 0 : index
    %4 = vector.load %arg5[%c0_5, %c0_6] : memref<128x128xbf16, #tpu.memory_space<vmem>>, vector<128x128xbf16>
    %cst_7 = arith.constant dense<0.000000e+00> : vector<128x128xf32>
    %5 = tpu.matmul %3, %4, %cst_7 {dimension_numbers = #tpu.dot_dimension_numbers<[1], [0], [0], [1], [0, 0, 1, 1], [], []>} : vector<128x128xbf16>, vector<128x128xbf16>, vector<128x128xf32> -> vector<128x128xf32>
    %6 = arith.truncf %2 : vector<128x128xf32> to vector<128x128xbf16>
    %c0_8 = arith.constant 0 : index
    %c0_9 = arith.constant 0 : index
    %7 = vector.load %arg6[%c0_8, %c0_9] : memref<128x128xbf16, #tpu.memory_space<vmem>>, vector<128x128xbf16>
    tpu.vector_store %arg6[%c0_8, %c0_9], %6 {strides = array<i32>} : memref<128x128xbf16, #tpu.memory_space<vmem>>, vector<128x128xbf16>,
    %8 = arith.truncf %5 : vector<128x128xf32> to vector<128x128xbf16>
    %c0_10 = arith.constant 0 : index
    %c0_11 = arith.constant 0 : index
    %9 = vector.load %arg7[%c0_10, %c0_11] : memref<128x128xbf16, #tpu.memory_space<vmem>>, vector<128x128xbf16>
    tpu.vector_store %arg7[%c0_10, %c0_11], %8 {strides = array<i32>} : memref<128x128xbf16, #tpu.memory_space<vmem>>, vector<128x128xbf16>,
    %c0_i32 = arith.constant 0 : i32
    %10 = arith.cmpi eq, %arg1, %c0_i32 : i32
    %11 = arith.extui %10 : i1 to i32
    %c0_i32_12 = arith.constant 0 : i32
    %12 = arith.cmpi ne, %11, %c0_i32_12 : i32
    scf.if %12 {
      %cst_24 = arith.constant 0.000000e+00 : f32
      %31 = vector.broadcast %cst_24 : f32 to vector<8x128xf32>
      %c0_25 = arith.constant 0 : index
      %c0_26 = arith.constant 0 : index
      %c0_27 = arith.constant 0 : index
      %32 = vector.load %arg8[%c0_25, %c0_26, %c0_27] : memref<1x8x128xf32, #tpu.memory_space<vmem>>, vector<1x8x128xf32>
      %33 = vector.shape_cast %32 : vector<1x8x128xf32> to vector<8x128xf32>
      %34 = vector.shape_cast %31 : vector<8x128xf32> to vector<1x8x128xf32>
      tpu.vector_store %arg8[%c0_25, %c0_26, %c0_27], %34 {strides = array<i32>} : memref<1x8x128xf32, #tpu.memory_space<vmem>>, vector<1x8x128xf32>,
    } else {
    }
    %c0_13 = arith.constant 0 : index
    %c0_14 = arith.constant 0 : index
    %c0_15 = arith.constant 0 : index
    %13 = vector.load %arg8[%c0_13, %c0_14, %c0_15] : memref<1x8x128xf32, #tpu.memory_space<vmem>>, vector<1x8x128xf32>
    %14 = vector.shape_cast %13 : vector<1x8x128xf32> to vector<8x128xf32>
    %cst_16 = arith.constant dense<0.000000e+00> : vector<128xf32>
    %15 = vector.multi_reduction <add>, %2, %cst_16 [0] : vector<128x128xf32> to vector<128xf32>
    %16 = vector.shape_cast %15 : vector<128xf32> to vector<1x128xf32>
    %17 = arith.mulf %2, %2 : vector<128x128xf32>
    %cst_17 = arith.constant dense<0.000000e+00> : vector<128xf32>
    %18 = vector.multi_reduction <add>, %17, %cst_17 [0] : vector<128x128xf32> to vector<128xf32>
    %19 = vector.shape_cast %18 : vector<128xf32> to vector<1x128xf32>
    %cst_18 = arith.constant dense<0.000000e+00> : vector<128xf32>
    %20 = vector.multi_reduction <add>, %5, %cst_18 [0] : vector<128x128xf32> to vector<128xf32>
    %21 = vector.shape_cast %20 : vector<128xf32> to vector<1x128xf32>
    %22 = arith.mulf %5, %5 : vector<128x128xf32>
    %cst_19 = arith.constant dense<0.000000e+00> : vector<128xf32>
    %23 = vector.multi_reduction <add>, %22, %cst_19 [0] : vector<128x128xf32> to vector<128xf32>
    %24 = vector.shape_cast %23 : vector<128xf32> to vector<1x128xf32>
    %cst_20 = arith.constant 0.000000e+00 : f32
    %25 = vector.broadcast %cst_20 : f32 to vector<4x128xf32>
    %26 = tpu.concatenate %16, %19, %21, %24, %25 in 0 : vector<1x128xf32>, vector<1x128xf32>, vector<1x128xf32>, vector<1x128xf32>, vector<4x128xf32> -> vector<8x128xf32>
    %27 = arith.addf %14, %26 : vector<8x128xf32>
    %c0_21 = arith.constant 0 : index
    %c0_22 = arith.constant 0 : index
    %c0_23 = arith.constant 0 : index
    %28 = vector.load %arg8[%c0_21, %c0_22, %c0_23] : memref<1x8x128xf32, #tpu.memory_space<vmem>>, vector<1x8x128xf32>
    %29 = vector.shape_cast %28 : vector<1x8x128xf32> to vector<8x128xf32>
    %30 = vector.shape_cast %27 : vector<8x128xf32> to vector<1x8x128xf32>
    tpu.vector_store %arg8[%c0_21, %c0_22, %c0_23], %30 {strides = array<i32>} : memref<1x8x128xf32, #tpu.memory_space<vmem>>, vector<1x8x128xf32>,
    return
  }
  func.func @transform_0(%arg0: i32, %arg1: i32) -> (i32, i32) {
    %c2_i32 = arith.constant 2 : i32
    %0 = arith.muli %arg0, %c2_i32 : i32
    %1 = arith.addi %0, %arg1 : i32
    %c0_i32 = arith.constant 0 : i32
    %c0_i32_0 = arith.constant 0 : i32
    return %1, %c0_i32 : i32, i32
  }
  func.func @transform_1(%arg0: i32, %arg1: i32) -> (i32, i32) {
    %c0_i32 = arith.constant 0 : i32
    %c0_i32_0 = arith.constant 0 : i32
    %c0_i32_1 = arith.constant 0 : i32
    return %c0_i32, %c0_i32_0 : i32, i32
  }
  func.func @transform_2(%arg0: i32, %arg1: i32) -> (i32, i32) {
    %c2_i32 = arith.constant 2 : i32
    %0 = arith.muli %arg0, %c2_i32 : i32
    %1 = arith.addi %0, %arg1 : i32
    %c0_i32 = arith.constant 0 : i32
    %c0_i32_0 = arith.constant 0 : i32
    return %1, %c0_i32 : i32, i32
  }
  func.func @transform_3(%arg0: i32, %arg1: i32) -> (i32, i32) {
    %c0_i32 = arith.constant 0 : i32
    %c0_i32_0 = arith.constant 0 : i32
    %c0_i32_1 = arith.constant 0 : i32
    return %c0_i32, %c0_i32_0 : i32, i32
  }
  func.func @transform_4(%arg0: i32, %arg1: i32) -> (i32, i32) {
    %c2_i32 = arith.constant 2 : i32
    %0 = arith.muli %arg0, %c2_i32 : i32
    %1 = arith.addi %0, %arg1 : i32
    %c0_i32 = arith.constant 0 : i32
    %c0_i32_0 = arith.constant 0 : i32
    return %1, %c0_i32 : i32, i32
  }
  func.func @transform_5(%arg0: i32, %arg1: i32) -> (i32, i32) {
    %c2_i32 = arith.constant 2 : i32
    %0 = arith.muli %arg0, %c2_i32 : i32
    %1 = arith.addi %0, %arg1 : i32
    %c0_i32 = arith.constant 0 : i32
    %c0_i32_0 = arith.constant 0 : i32
    return %1, %c0_i32 : i32, i32
  }
  func.func @transform_6(%arg0: i32, %arg1: i32) -> (i32, i32, i32) {
    %c0_i32 = arith.constant 0 : i32
    %c0_i32_0 = arith.constant 0 : i32
    %c0_i32_1 = arith.constant 0 : i32
    return %arg0, %c0_i32, %c0_i32_0 : i32, i32, i32
  }
}

</mosaic_0001>

<bundles_post_ra>
// kernel: tpu_custom_call.1
= control target key start
LH: loop header
LB: loop body
LE: loop exit
PB: predicated region body
PF: predicated region fallthrough
CT: control target
= control target key end

     0   :  { %s2868_s0 = inlined_call_operand.hbm [shape: bf16[512,128], index: 0, kind: input, shape index: {}]   ;;  %s2869_s1 = inlined_call_operand.hbm [shape: bf16[128,128], index: 1, kind: input, shape index: {}]   ;;  %s2870_s2 = inlined_call_operand.hbm [shape: bf16[512,128], index: 2, kind: input, shape index: {}]   ;;  %s2871_s3 = inlined_call_operand.hbm [shape: bf16[128,128], index: 3, kind: input, shape index: {}]   ;;  %s2872_s4 = inlined_call_operand.hbm [shape: bf16[512,128], index: 4, kind: output, shape index: {0}]   ;;  %s2873_s5 = inlined_call_operand.hbm [shape: bf16[512,128], index: 5, kind: output, shape index: {1}]   ;;  %s2874_s6 = inlined_call_operand.hbm [shape: f32[2,8,128], index: 6, kind: output, shape index: {2}]  }
   0x1   :  { %2901 = sst [smem:[#allocation31_spill]] %s2869_s1 }
   0x2   :  { %2902 = sst [smem:[#allocation32_spill]] %s2872_s4 }
   0x3   :  { %2903 = sst [smem:[#allocation33_spill]] %s2873_s5 }
   0x4   :  { %2904 = sst [smem:[#allocation34_spill]] %s2874_s6 }
   0x5   :  { %12 = vsyncpa [#allocation3], 0 }
   0x6   :  { %14 = vsyncpa [#allocation3 + $0x1], 0 }
   0x7   :  { %15 = vsyncpa [#allocation6], 0 }
   0x8   :  { %16 = vsyncpa [#allocation4], 0 }
   0x9   :  { %18 = vsyncpa [#allocation4 + $0x1], 0 }
   0xa   :  { %19 = vsyncpa [#allocation11], 0 }
   0xb   :  { %21 = vsyncpa [#allocation11 + $0x1], 0  ;;  %s2247_s21 = smov 0   ;;  %s2249_s22 = smov 0  }
   0xc   :  { %s2251_s23 = smov 0   ;;  %s2253_s24 = smov 0  }
   0xd   :  { %s2255_s25 = smov 0   ;;  %s2257_s26 = smov 0  }
   0xe   :  { %s2259_s27 = smov 0   ;;  %s2261_s28 = smov 0  }
   0xf   :  { %s2263_s29 = smov 0   ;;  %s2265_s30 = smov 0  }
  0x10   :  { %s2267_s7 = smov 0  }
  0x11 LB: > { %2905 = sst [smem:[#allocation20_spill]] %s2162_s22  ;;  %s2301_s8 = sadd.s32 4294967295, %s2198_s7   ;;  %s2198_s7 = sphi %s2267_s7, %s27_s7   ;;  %s2194_s30 = sphi %s2265_s30, %s2963_s30   ;;  %s2190_s29 = sphi %s2263_s29, %s2962_s29   ;;  %s2186_s28 = sphi %s2261_s28, %s2961_s28   ;;  %s2182_s27 = sphi %s2259_s27, %s2956_s27   ;;  %s2178_s26 = sphi %s2257_s26, %s2960_s26   ;;  %s2174_s25 = sphi %s2255_s25, %s2959_s25   ;;  %s2170_s24 = sphi %s2253_s24, %s2955_s24   ;;  %s2166_s23 = sphi %s2251_s23, %s2958_s23   ;;  %s2162_s22 = sphi %s2249_s22, %s2957_s22   ;;  %s2158_s21 = sphi %s2247_s21, %s2954_s21  }
  0x12   : > { %2906 = sst [smem:[#allocation21_spill]] %s2170_s24  ;;  %s2876_s9 = sadd.s32 4294967294, %s2198_s7  }
  0x13   : > { %2907 = sst [smem:[#allocation22_spill]] %s2174_s25  ;;  %p63_p0 = scmp.ne.s32.totalorder %s2174_s25, %s2170_s24 }
  0x14   : > { %2908 = sst [smem:[#allocation23_spill]] %s2182_s27  ;;  %p2898_p1 = scmp.eq.s32.totalorder %s2301_s8, 0 }
  0x15   : > { %2909 = sst [smem:[#allocation24_spill]] %s2186_s28  ;;  %p2875_p2 = scmp.eq.s32.totalorder %s2301_s8, 3 }
  0x16   : > { %2910 = sst [smem:[#allocation25_spill]] %s2190_s29  ;;  %p169_p3 = scmp.eq.s32.totalorder %s2876_s9, 3 }
  0x17   : > { %p2312_p4 = por %p2898_p1, %p63_p0  ;;  %p218_p6 = scmp.ne.s32.totalorder %s2166_s23, %s2162_s22 }
  0x18   : > { %p2317_p5 = por %p169_p3, %p63_p0  ;;  %p224_p7 = scmp.ne.s32.totalorder %s2162_s22, %s2158_s21 }
  0x19   : > { %s2911_s10 = scalar_select %p2312_p4, 1, 0 }
  0x1a   : > { %s2913_s12 = scalar_select %p2317_p5, 1, 0 }
  0x1b   : > { %2912 = sst [smem:[#allocation26_spill]] %s2911_s10  ;;  %p1400_p8 = scmp.ge.s32.totalorder %s2198_s7, 1 }
  0x1c   : > { %2914 = sst [smem:[#allocation27_spill]] %s2913_s12  ;;  %p2327_p9 = por %p218_p6, %p2875_p2 }
  0x1d   : > { %p232_p10 = scmp.lt.s32.totalorder %s2198_s7, 5  ;;  %p2332_p11 = por %p224_p7, %p169_p3 }
  0x1e   : > { %s2915_s13 = scalar_select %p2327_p9, 1, 0 }
  0x1f   : > { %s2917_s14 = scalar_select %p2332_p11, 1, 0 }
  0x20   : > { %2916 = sst [smem:[#allocation28_spill]] %s2915_s13  ;;  %p2336_p12 = pnand %p1400_p8, %p232_p10 }
  0x21   : > { %2918 = sst [smem:[#allocation29_spill]] %s2917_s14  ;;  %s2200_s16 = smov [#allocation5]  }
  0x22   : > { %s244_s17 = sshll.u32 %s2200_s16, 4  ;;  %p1741_p13 = pneg %p2336_p12  ;;  %s245_s17 = int_to_ptr.vmem [resolvable:$true] %s244_s17 }
  0x23   : > { %s1909_s19 = scalar_lea.vmem %s245_s17, 1024  ;;  %p1917_p10 = scmp.lt.s32.totalorder %s245_s17, %s245_s17 }
  0x24   : > { %p2344_p0 = pnand %p1741_p13, %p2898_p1  ;;  %p1910_p6 = scmp.ne.s32.totalorder %s245_s17, %s1909_s19 }
  0x25   : > { %p1918_p2 = scmp.lt.s32.totalorder %s1909_s19, %s1909_s19 }
  0x26   : > { %p2899_p3 = pneg %p2344_p0 }
  0x27   : > { %p1919_p11 = por %p1918_p2, %p1917_p10 }
  0x28   : > { %p1912_p7 = pnand %p1910_p6, %p2899_p3 }
  0x2a   : > { %p1913_p8 = pneg %p1912_p7 }
  0x2c   : > { %p1920_p5 = pnand %p1919_p11, %p1913_p8 }
  0x2e   : > { %1923 = shalt.err (!%p1920_p5)
}
  0x2f   : > { %s2880_s20 = smov 64   ;;  %s2882_s21 = smov 4  }
  0x30   : > { %s2921_s1 = sld [smem:[#allocation31_spill]]  ;;  %s36_s9 = sadd.s32 1, %s2190_s29 }
  0x31   : > { %s39_s11 = sadd.s32 1, %s2194_s30  ;;  %p37_p2 = scmp.ge.s32.totalorder %s36_s9, 2 }
  0x32   : > { %s1392_s14 = sshll.u32 %s2194_s30, 1  ;;  %s50_s24 = sadd.s32 1, %s2178_s26 }
  0x33   : > { %s2365_s12 = sadd.s32 %s2190_s29, %s1392_s14  ;;  %s2965_s9 = smov (%p37_p2, %s36_s9), 0 }
  0x34   : > { %s2967_s11 = smov (!%p37_p2, %s39_s11), %s2194_s30  ;;  %p57_p5 = scmp.ne.s32.totalorder %s2178_s26, %s2174_s25 }
  0x35   : > { %p58_p11 = scmp.eq.s32.totalorder %s2198_s7, 0  ;;  %p41_p13 = scmp.ge.s32.totalorder %s2967_s11, 2 }
  0x36   : > { %1744 = dma.hbm_to_vmem [thread:$0]  (!%p2344_p0), %s2921_s1, 1024, %s245_s17, [#allocation6], %s2880_s20, %s2880_s20, %s2882_s21  }
  0x37   : > { %p1767_p6 = scmp.lt.s32.totalorder %s2198_s7, 4  ;;  %p2375_p7 = por %p58_p11, %p57_p5 }
  0x38   : > { %p2923_p8 = scmp.eq.s32.totalorder %s2301_s8, 3  ;;  %s2969_s11 = smov (%p41_p13, %s2967_s11), 0 }
  0x39   : > { %s271_s16 = sand.u32 1, %s2198_s7   ;;  %s273_s19 = sand.u32 1, %s2178_s26  }
  0x3a   : > { %p2381_p10 = por %p2923_p8, %p57_p5  ;;  %s1393_s20 = sshll.u32 %s2969_s11, 1 }
  0x3b   : > { %s205_s21 = ssub.s32 %s2194_s30, %s2969_s11  ;;  %s46_s1 = sadd.s32 %s1393_s20, %s2965_s9 }
  0x3c   : > { %s2924_s14 = scalar_select %p2381_p10, 1, 0 }
  0x3d   : > { %p206_p2 = scmp.eq.s32.totalorder %s205_s21, 0  ;;  %s47_s29 = ssub.s32 %s2365_s12, %s46_s1 }
  0x3e   : > { %2925 = sst [smem:[#allocation30_spill]] %s2924_s14  ;;  %p48_p11 = scmp.eq.s32.totalorder %s47_s29, 0 }
  0x3f   : > { %s1404_s6 = sshll.u32 %s273_s19, 6  ;;  %s2926_s13 = sadd.s32 1, %s2166_s23 }
  0x40   : > { %s2397_s4 = scalar_select %p206_p2, %s2166_s23, %s2926_s13  }
  0x41   : > { %s2400_s5 = scalar_select %p48_p11, %s2178_s26, %s50_s24  }
  0x42   : > { %s1497_s14 = sshll.u32 %s2365_s12, 10  ;;  %s275_s10 = scalar_lea.vmem [#allocation2], %s1404_s6 }
  0x43   : > { %s283_s22 = scalar_lea.hbm %s2868_s0, %s1497_s14  ;;  %s284_s25 = sshll.u32 %s275_s10, 4  ;;  %s285_s25 = int_to_ptr.vmem [resolvable:$true] %s284_s25 }
  0x44   : > { %p2410_p5 = pnand %p1767_p6, %p2375_p7  ;;  %s298_s1 = scalar_lea.vmem [#allocation7], %s1404_s6 }
  0x45   : > { %s307_s29 = sshll.u32 %s298_s1, 4  ;;  %s2414_s24 = scalar_lea.sflag [#allocation3], %s271_s16  ;;  %s2432_s29 = int_to_ptr.vmem [resolvable:$true] %s307_s29 }
  0x46   : > { %p2900_p13 = pneg %p2410_p5  ;;  %s1937_s12 = scalar_lea.vmem %s285_s25, 1024 }
  0x47   : > { %p1938_p8 = scmp.ne.s32.totalorder %s285_s25, %s1937_s12  ;;  %s2203_s27 = smov [#allocation2]  }
  0x48   : > { %s1942_s28 = sshll.u32 %s2203_s27, 4  ;;  %s1943_s28 = int_to_ptr.vmem [resolvable:$false] %s1942_s28 }
  0x49   : > { %p1940_p2 = pnand %p1938_p8, %p2900_p13  ;;  %s1944_s10 = scalar_lea.vmem %s1943_s28, 2048 }
  0x4a   : > { %p1945_p6 = scmp.lt.s32.totalorder %s285_s25, %s1943_s28  ;;  %p1946_p7 = scmp.lt.s32.totalorder %s1944_s10, %s1937_s12 }
  0x4b   : > { %p1941_p11 = pneg %p1940_p2 }
  0x4c   : > { %p1947_p1 = por %p1946_p7, %p1945_p6 }
  0x4e   : > { %p1948_p3 = pnand %p1947_p1, %p1941_p11 }
  0x50   : > { %1951 = shalt.err (!%p1948_p3)
}
  0x51   : > { %s2928_s6 = smov 4   ;;  %s2929_s13 = smov 64  }
  0x52   : > { %1751 = dma.hbm_to_vmem [thread:$0]  (!%p2410_p5), %s283_s22, 1024, %s285_s25, %s2414_s24, %s2929_s13, %s2929_s13, %s2928_s6  }
  0x53   : > { %s2430_s16 = scalar_lea.hbm %s2870_s2, %s1497_s14  ;;  %s2204_s19 = smov [#allocation8]  }
  0x54   : > { %s257_s1 = sshll.u32 %s2204_s19, 4  ;;  %p2930_p3 = pneg %p2344_p0  ;;  %s258_s1 = int_to_ptr.vmem [resolvable:$true] %s257_s1 }
  0x55   : > { %s1963_s12 = scalar_lea.vmem %s258_s1, 1024  ;;  %p1971_p11 = scmp.lt.s32.totalorder %s258_s1, %s258_s1 }
  0x56   : > { %p1964_p1 = scmp.ne.s32.totalorder %s258_s1, %s1963_s12  ;;  %p1972_p6 = scmp.lt.s32.totalorder %s1963_s12, %s1963_s12 }
  0x58   : > { %p1966_p8 = pnand %p1964_p1, %p2930_p3  ;;  %p1973_p7 = por %p1972_p6, %p1971_p11 }
  0x5a   : > { %p1967_p2 = pneg %p1966_p8 }
  0x5c   : > { %p1974_p13 = pnand %p1973_p7, %p1967_p2 }
  0x5e   : > { %1977 = shalt.err (!%p1974_p13)
}
  0x5f   : > { %1747 = dma.hbm_to_vmem [thread:$0]  (!%p2344_p0), %s2871_s3, 1024, %s258_s1, [#allocation6], %s2929_s13, %s2929_s13, %s2928_s6  }
  0x60   : > { %s1991_s14 = scalar_lea.vmem %s2432_s29, 1024  ;;  %p2931_p3 = pneg %p2410_p5 }
  0x61   : > { %p1992_p1 = scmp.ne.s32.totalorder %s2432_s29, %s1991_s14  ;;  %s2205_s27 = smov [#allocation7]  }
  0x62   : > { %s1996_s28 = sshll.u32 %s2205_s27, 4  ;;  %s1997_s28 = int_to_ptr.vmem [resolvable:$false] %s1996_s28 }
  0x63   : > { %p1994_p8 = pnand %p1992_p1, %p2931_p3  ;;  %s1998_s18 = scalar_lea.vmem %s1997_s28, 2048 }
  0x64   : > { %p1999_p13 = scmp.lt.s32.totalorder %s2432_s29, %s1997_s28  ;;  %p2000_p11 = scmp.lt.s32.totalorder %s1998_s18, %s1991_s14 }
  0x65   : > { %p1995_p2 = pneg %p1994_p8 }
  0x66   : > { %p2001_p6 = por %p2000_p11, %p1999_p13 }
  0x68   : > { %p2002_p7 = pnand %p2001_p6, %p1995_p2 }
  0x6a   : > { %2005 = shalt.err (!%p2002_p7)
}
  0x6b   : > { %1754 = dma.hbm_to_vmem [thread:$0]  (!%p2410_p5), %s2430_s16, 1024, %s2432_s29, %s2414_s24, %s2929_s13, %s2929_s13, %s2928_s6  }
  0x6c   : > { %319 = sbr.rel (%p2336_p12) target bundleno = 504 (0x1f8), region = 36  ;;  %s2932_s10 = sld [smem:[#allocation22_spill]] (!%p2336_p12) }
  0x6d   : > { %s321_s17 = sand.u32 (!%p2336_p12), 1, %s2301_s8  }
  0x6e   : > { %s322_s20 = scalar_lea.sflag (!%p2336_p12), [#allocation3], %s321_s17 }
  0x72   : > { %s323_s19 = sand.u32 1, %s2932_s10  }
  0x73   : > { %s2465_s1 = sshll.u32 %s323_s19, 6 }
  0x74   : > { %s2470_s12 = scalar_lea.vmem [#allocation2], %s2465_s1 }
  0x75   : > { %2129 = dma.done.wait (%p2312_p4), %s322_s20, 1024  }
  0x76   : > { %2131 = vsyncadd (%p2312_p4), %s322_s20, 4294966272  ;;  %p2934_p12 = scmp.eq.s32.totalorder %s2301_s8, 0 }
  0x78   : > { %2133 = dma.done.wait (%p2934_p12), [#allocation6], 1024   ;;  %p2935_p0 = pmov %p2934_p12 }
  0x79   : > { %s2481_s15 = scalar_lea.vmem [#allocation7], %s2465_s1 }
  0x7a   : > { %2135 = vsyncadd (%p2935_p0), [#allocation6], 4294966272 }
  0x7b   : > { %2137 = dma.done.wait (%p2312_p4), %s322_s20, 1024  }
  0x7c   : > { %2139 = vsyncadd (%p2312_p4), %s322_s20, 4294966272  ;;  %p2936_p5 = pmov %p2935_p0 }
  0x7d   : > { %p2937_p1 = pmov %p2935_p0 }
  0x7e   : > { %2141 = dma.done.wait (%p2936_p5), [#allocation6], 1024  }
  0x7f   : > { %2143 = vsyncadd (%p2937_p1), [#allocation6], 4294966272  ;;  %s2938_s29 = sld [smem:[#allocation20_spill]]  ;;  %v1866_v0 = vld [vmem:[#allocation5 + $0x38] sm:$0xff]   ;;  %v1868_v2 = vld [vmem:[#allocation5 + $0x30] sm:$0xff]   ;;  %s2529_s13 = scalar_lea.vmem [#allocation9], %s2465_s1 }
  0x80   : > { %v1867_v1 = vld [vmem:[#allocation8 + $0x38] sm:$0xff]   ;;  %1659 = vmatprep.subr.bf16.mxu0 %v1866_v0  ;;  %v1869_v3 = vld [vmem:[#allocation8 + $0x30] sm:$0xff]   ;;  %v1870_v4 = vld [vmem:[#allocation5 + $0x28] sm:$0xff]   ;;  %s2537_s16 = scalar_lea.vmem [#allocation10], %s2465_s1  ;;  %s2939_s25 = sld [smem:[#allocation23_spill]] }
  0x81   : > { %1691 = vmatprep.subr.bf16.mxu1 %v1867_v1  ;;  %1660 = vmatpush3.bf16.msra.mxu0 %v1866_v0  ;;  %v1871_v5 = vld [vmem:[#allocation8 + $0x28] sm:$0xff]   ;;  %v1872_v6 = vld [vmem:[#allocation5 + $0x20] sm:$0xff]   ;;  %v1874_v8 = vld [vmem:[#allocation5 + $0x18] sm:$0xff]  }
  0x82   : > { %1692 = vmatpush3.bf16.msra.mxu1 %v1867_v1  ;;  %1661 = vmatprep.subr.bf16.mxu0 %v1868_v2  ;;  %v1873_v7 = vld [vmem:[#allocation8 + $0x20] sm:$0xff]   ;;  %v1875_v9 = vld [vmem:[#allocation8 + $0x18] sm:$0xff]   ;;  %v1876_v10 = vld [vmem:[#allocation5 + $0x10] sm:$0xff]  }
  0x83   : > { %1693 = vmatprep.subr.bf16.mxu1 %v1869_v3  ;;  %v1877_v11 = vld [vmem:[#allocation8 + $0x10] sm:$0xff]   ;;  %v1882_v12 = vld [vmem:[%s2470_s12] sm:$0xff]   ;;  %v1878_v14 = vld [vmem:[#allocation5 + $0x8] sm:$0xff]  }
  0x84   : > { %v1883_v13 = vld [vmem:[%s2481_s15] sm:$0xff]   ;;  %1675 = vmatprep.mubr.bf16.mxu0 %v1882_v12  ;;  %v1879_v15 = vld [vmem:[#allocation8 + $0x8] sm:$0xff]   ;;  %v1886_v20 = vld [vmem:[%s2470_s12 + $0x10] sm:$0xff]  }
  0x85   : > { %s383_s24 = sand.u32 1, %s2938_s29   ;;  %1662 = vmatpush3.bf16.msra.mxu0 %v1868_v2  ;;  %1707 = vmatprep.mubr.bf16.mxu1 %v1883_v13  ;;  %v1880_v16 = vld [vmem:[#allocation5] sm:$0xff]   ;;  %v1884_v18 = vld [vmem:[%s2470_s12 + $0x8] sm:$0xff]   ;;  %v1887_v21 = vld [vmem:[%s2481_s15 + $0x10] sm:$0xff]  }
  0x86   : > { %s2492_s6 = sshll.u32 %s383_s24, 3  ;;  %1694 = vmatpush3.bf16.msra.mxu1 %v1869_v3  ;;  %1663 = vmatprep.subr.bf16.mxu0 %v1870_v4  ;;  %v1881_v17 = vld [vmem:[#allocation8] sm:$0xff]   ;;  %v1885_v19 = vld [vmem:[%s2481_s15 + $0x8] sm:$0xff]   ;;  %v1888_v22 = vld [vmem:[%s2470_s12 + $0x18] sm:$0xff]   ;;  %p1484_p4 = scmp.ne.s32.totalorder %s2939_s25, 0 }
  0x87   : > { %1695 = vmatprep.subr.bf16.mxu1 %v1871_v5  ;;  %v1889_v23 = vld [vmem:[%s2481_s15 + $0x18] sm:$0xff]   ;;  %v1890_v24 = vld [vmem:[%s2470_s12 + $0x20] sm:$0xff]   ;;  %v1892_v26 = vld [vmem:[%s2470_s12 + $0x28] sm:$0xff]   ;;  %s2629_s22 = scalar_lea.vmem [#allocation12], %s2492_s6 }
  0x88   : > { %v1891_v25 = vld [vmem:[%s2481_s15 + $0x20] sm:$0xff]   ;;  %v1893_v27 = vld [vmem:[%s2481_s15 + $0x28] sm:$0xff]   ;;  %v1894_v28 = vld [vmem:[%s2470_s12 + $0x30] sm:$0xff]  }
  0x89   : > { %1664 = vmatpush3.bf16.msra.mxu0 %v1870_v4  ;;  %v1895_v29 = vld [vmem:[%s2481_s15 + $0x30] sm:$0xff]   ;;  %v1896_v30 = vld [vmem:[%s2470_s12 + $0x38] sm:$0xff]  }
  0x8a   : > { %1696 = vmatpush3.bf16.msra.mxu1 %v1871_v5  ;;  %1665 = vmatprep.subr.bf16.mxu0 %v1872_v6  ;;  %v1897_v31 = vld [vmem:[%s2481_s15 + $0x38] sm:$0xff]  }
  0x8b   : > { %1697 = vmatprep.subr.bf16.mxu1 %v1873_v7 }
  0x8d   : > { %1666 = vmatpush3.bf16.msra.mxu0 %v1872_v6 }
  0x8e   : > { %1698 = vmatpush3.bf16.msra.mxu1 %v1873_v7  ;;  %1667 = vmatprep.subr.bf16.mxu0 %v1874_v8 }
  0x8f   : > { %1699 = vmatprep.subr.bf16.mxu1 %v1875_v9 }
  0x91   : > { %1668 = vmatpush3.bf16.msra.mxu0 %v1874_v8 }
  0x92   : > { %1700 = vmatpush3.bf16.msra.mxu1 %v1875_v9  ;;  %1669 = vmatprep.subr.bf16.mxu0 %v1876_v10 }
  0x93   : > { %1701 = vmatprep.subr.bf16.mxu1 %v1877_v11 }
  0x95   : > { %1670 = vmatpush3.bf16.msra.mxu0 %v1876_v10 }
  0x96   : > { %1702 = vmatpush3.bf16.msra.mxu1 %v1877_v11  ;;  %1671 = vmatprep.subr.bf16.mxu0 %v1878_v14 }
  0x97   : > { %1703 = vmatprep.subr.bf16.mxu1 %v1879_v15 }
  0x99   : > { %1672 = vmatpush3.bf16.msra.mxu0 %v1878_v14 }
  0x9a   : > { %1704 = vmatpush3.bf16.msra.mxu1 %v1879_v15  ;;  %1673 = vmatprep.subr.bf16.mxu0 %v1880_v16 }
  0x9b   : > { %1705 = vmatprep.subr.bf16.mxu1 %v1881_v17 }
  0x9d   : > { %1674 = vmatpush3.bf16.msra.mxu0 %v1880_v16 }
  0x9e   : > { %1706 = vmatpush3.bf16.msra.mxu1 %v1881_v17 }
  0xa0   : > { %1676 = vmatmul.mubr.bf16.vlgmr.msra.gmra.mxu0 %v1884_v18 }
  0xa1   : > { %1708 = vmatmul.mubr.bf16.vlgmr.msra.gmra.mxu1 %v1885_v19  ;;  %1679 = vmatprep.mubr.bf16.mxu0 %v1886_v20 }
  0xa2   : > { %1711 = vmatprep.mubr.bf16.mxu1 %v1887_v21 }
  0xa8   : > { %1680 = vmatmul.mubr.bf16.gmra.mxu0 %v1888_v22 }
  0xa9   : > { %1712 = vmatmul.mubr.bf16.gmra.mxu1 %v1889_v23  ;;  %1683 = vmatprep.mubr.bf16.mxu0 %v1890_v24 }
  0xaa   : > { %1715 = vmatprep.mubr.bf16.mxu1 %v1891_v25 }
  0xb0   : > { %1684 = vmatmul.mubr.bf16.gmra.mxu0 %v1892_v26 }
  0xb1   : > { %1716 = vmatmul.mubr.bf16.gmra.mxu1 %v1893_v27  ;;  %1687 = vmatprep.mubr.bf16.mxu0 %v1894_v28 }
  0xb2   : > { %1719 = vmatprep.mubr.bf16.mxu1 %v1895_v29 }
  0xb8   : > { %1688 = vmatmul.mubr.bf16.gmra.mxu0 %v1896_v30 }
  0xb9   : > { %1720 = vmatmul.mubr.bf16.gmra.mxu1 %v1897_v31 }
 0x160   : > { %v2510_v32 = vpop.f32.mrf.mxu0 }
 0x161   : > { %v2512_v33 = vpop.f32.mrf.mxu1 }
 0x162   : > { %v2514_v34 = vpop.f32.mrf.mxu0 }
 0x163   : > { %v2516_v35 = vpop.f32.mrf.mxu1 }
 0x164   : > { %v2518_v36 = vpop.f32.mrf.mxu0 }
 0x165   : > { %v1541_v37 = vpack.c.bf16 %v2518_v36, %v2510_v32  ;;  %v2522_v38 = vpop.f32.mrf.mxu1 }
 0x166   : > { %v1581_v39 = vpack.c.bf16 %v2522_v38, %v2512_v33  ;;  %v2526_v40 = vpop.f32.mrf.mxu0 }
 0x167   : > { %1613 = vst [vmem:[%s2529_s13 + $0x8] sm:$0xff] %v1541_v37   ;;  %v1536_v41 = vpack.c.bf16 %v2526_v40, %v2514_v34  ;;  %v2534_v42 = vpop.f32.mrf.mxu1 }
 0x168   : > { %1620 = vst [vmem:[%s2537_s16 + $0x8] sm:$0xff] %v1581_v39   ;;  %v1576_v43 = vpack.c.bf16 %v2534_v42, %v2516_v35  ;;  %v2542_v44 = vpop.f32.mrf.mxu0 }
 0x169   : > { %1537 = vst [vmem:[%s2529_s13] sm:$0xff] %v1536_v41   ;;  %v2545_v45 = vpop.f32.mrf.mxu1 }
 0x16a   : > { %1577 = vst [vmem:[%s2537_s16] sm:$0xff] %v1576_v43   ;;  %v2548_v46 = vpop.f32.mrf.mxu0 }
 0x16b   : > { %v2550_v47 = vpop.f32.mrf.mxu1 }
 0x16c   : > { %v2552_v48 = vpop.f32.mrf.mxu0 }
 0x16d   : > { %v1551_v49 = vpack.c.bf16 %v2552_v48, %v2542_v44  ;;  %v2556_v50 = vpop.f32.mrf.mxu1 }
 0x16e   : > { %v1591_v51 = vpack.c.bf16 %v2556_v50, %v2545_v45  ;;  %v2560_v52 = vpop.f32.mrf.mxu0 }
 0x16f   : > { %1615 = vst [vmem:[%s2529_s13 + $0x18] sm:$0xff] %v1551_v49   ;;  %v1546_v53 = vpack.c.bf16 %v2560_v52, %v2548_v46  ;;  %v2565_v54 = vpop.f32.mrf.mxu1 }
 0x170   : > { %1622 = vst [vmem:[%s2537_s16 + $0x18] sm:$0xff] %v1591_v51   ;;  %v1586_v55 = vpack.c.bf16 %v2565_v54, %v2550_v47  ;;  %v2570_v56 = vpop.f32.mrf.mxu0 }
 0x171   : > { %1614 = vst [vmem:[%s2529_s13 + $0x10] sm:$0xff] %v1546_v53   ;;  %v2573_v57 = vpop.f32.mrf.mxu1 }
 0x172   : > { %1621 = vst [vmem:[%s2537_s16 + $0x10] sm:$0xff] %v1586_v55   ;;  %v2576_v58 = vpop.f32.mrf.mxu0 }
 0x173   : > { %v2578_v59 = vpop.f32.mrf.mxu1 }
 0x174   : > { %v2580_v60 = vpop.f32.mrf.mxu0 }
 0x175   : > { %v1561_v61 = vpack.c.bf16 %v2580_v60, %v2570_v56  ;;  %v2584_v62 = vpop.f32.mrf.mxu1 }
 0x176   : > { %v1601_v63 = vpack.c.bf16 %v2584_v62, %v2573_v57  ;;  %v2588_v0 = vpop.f32.mrf.mxu0 }
 0x177   : > { %1617 = vst [vmem:[%s2529_s13 + $0x28] sm:$0xff] %v1561_v61   ;;  %v1556_v1 = vpack.c.bf16 %v2588_v0, %v2576_v58  ;;  %v2593_v2 = vpop.f32.mrf.mxu1 }
 0x178   : > { %1624 = vst [vmem:[%s2537_s16 + $0x28] sm:$0xff] %v1601_v63   ;;  %v1596_v3 = vpack.c.bf16 %v2593_v2, %v2578_v59  ;;  %v2598_v4 = vpop.f32.mrf.mxu0 }
 0x179   : > { %1616 = vst [vmem:[%s2529_s13 + $0x20] sm:$0xff] %v1556_v1   ;;  %v2601_v5 = vpop.f32.mrf.mxu1 }
 0x17a   : > { %1623 = vst [vmem:[%s2537_s16 + $0x20] sm:$0xff] %v1596_v3   ;;  %v2604_v6 = vpop.f32.mrf.mxu0 }
 0x17b   : > { %v2606_v7 = vpop.f32.mrf.mxu1 }
 0x17c   : > { %v2608_v8 = vpop.f32.mrf.mxu0 }
 0x17d   : > { %v1571_v9 = vpack.c.bf16 %v2608_v8, %v2598_v4  ;;  %v2612_v10 = vpop.f32.mrf.mxu1 }
 0x17e   : > { %v1611_v11 = vpack.c.bf16 %v2612_v10, %v2601_v5  ;;  %v2616_v12 = vpop.f32.mrf.mxu0  ;;  %1012 = sbr.rel (%p1484_p4) target bundleno = 389 (0x185), region = 56 }
 0x17f   : > { %1619 = vst [vmem:[%s2529_s13 + $0x38] sm:$0xff] %v1571_v9   ;;  %v1566_v13 = vpack.c.bf16 %v2616_v12, %v2604_v6  ;;  %v2621_v14 = vpop.f32.mrf.mxu1 }
 0x180   : > { %1626 = vst [vmem:[%s2537_s16 + $0x38] sm:$0xff] %v1611_v11   ;;  %v1606_v15 = vpack.c.bf16 %v2621_v14, %v2606_v7 }
 0x181   : > { %1618 = vst [vmem:[%s2529_s13 + $0x30] sm:$0xff] %v1566_v13  }
 0x182   : > { %1625 = vst [vmem:[%s2537_s16 + $0x30] sm:$0xff] %v1606_v15  }
 0x183   : > { %v2206_v16 = vmov 0.0  }
 0x184   : > { %1013 = vst [vmem:[%s2629_s22] sm:$0xff] %v2206_v16 }
 0x185 PF: > { %s2940_s14 = sld [smem:[#allocation24_spill]]  ;;  %v1015_v17 = vadd.f32 %v2526_v40, %v2514_v34  ;;  %v1036_v18 = vmul.f32 %v2514_v34, %v2514_v34  ;;  %v1037_v19 = vmul.f32 %v2526_v40, %v2526_v40  ;;  %v1038_v21 = vmul.f32 %v2510_v32, %v2510_v32  ;;  %s1185_s29 = sshll.u32 %s2537_s16, 4  ;;  %s2658_s29 = int_to_ptr.vmem [resolvable:$true] %s1185_s29 }
 0x186   : > { %s2941_s27 = sld [smem:[#allocation23_spill]]  ;;  %v1039_v23 = vmul.f32 %v2518_v36, %v2518_v36  ;;  %v1073_v25 = vadd.f32 %v2534_v42, %v2516_v35  ;;  %s2664_s24 = scalar_lea.sflag [#allocation11], %s321_s17 }
 0x187   : > { %v1016_v20 = vadd.f32 %v2510_v32, %v1015_v17  ;;  %s2943_s12 = sld [smem:[#allocation33_spill]]  ;;  %v1052_v24 = vadd.f32 %v1037_v19, %v1036_v18  ;;  %s2006_s6 = scalar_lea.vmem %s2658_s29, 1024 }
 0x188   : > { %p2007_p3 = scmp.ne.s32.totalorder %s2658_s29, %s2006_s6  ;;  %s2207_s16 = smov [#allocation10]  }
 0x189   : > { %v1017_v22 = vadd.f32 %v2518_v36, %v1016_v20  ;;  %s2010_s25 = sshll.u32 %s2207_s16, 4  ;;  %s2011_s25 = int_to_ptr.vmem [resolvable:$false] %s2010_s25 }
 0x18a   : > { %p2008_p8 = pnand %p2007_p3, %p2381_p10  ;;  %p2013_p13 = scmp.lt.s32.totalorder %s2658_s29, %s2011_s25 }
 0x18b   : > { %s1488_s18 = sshll.u32 %s2940_s14, 1 }
 0x18c   : > { %s2641_s10 = sadd.s32 %s2941_s27, %s1488_s18  ;;  %p2009_p2 = pneg %p2008_p8 }
 0x18d   : > { %s1531_s21 = sshll.u32 %s2641_s10, 10  ;;  %s2012_s27 = scalar_lea.vmem %s2011_s25, 2048 }
 0x18e   : > { %s2652_s15 = scalar_lea.hbm %s2943_s12, %s1531_s21  ;;  %p2014_p11 = scmp.lt.s32.totalorder %s2012_s27, %s2006_s6 }
 0x190   : > { %p2015_p6 = por %p2014_p11, %p2013_p13 }
 0x192   : > { %p2016_p7 = pnand %p2015_p6, %p2009_p2 }
 0x194   : > { %2019 = shalt.err (!%p2016_p7)
}
 0x195   : > { %s2020_s8 = scalar_lea.hbm %s2652_s15, 1024  ;;  %s2024_s1 = scalar_lea.hbm %s2943_s12, 4096 }
 0x196   : > { %p2021_p12 = scmp.ne.s32.totalorder %s2652_s15, %s2020_s8  ;;  %p2025_p1 = scmp.lt.s32.totalorder %s2652_s15, %s2943_s12 }
 0x197   : > { %p2026_p4 = scmp.lt.s32.totalorder %s2024_s1, %s2020_s8 }
 0x198   : > { %p2022_p0 = pnand %p2021_p12, %p2381_p10 }
 0x199   : > { %p2027_p3 = por %p2026_p4, %p2025_p1 }
 0x19a   : > { %p2023_p5 = pneg %p2022_p0 }
 0x19c   : > { %p2028_p8 = pnand %p2027_p3, %p2023_p5 }
 0x19e   : > { %2031 = shalt.err (!%p2028_p8)
}
 0x19f   : > { %s2208_s6 = smov 64   ;;  %s2209_s27 = smov 4   ;;  %v1018_v26 = vadd.f32 %v1017_v22, %v2548_v46  ;;  %v1040_v27 = vmul.f32 %v2548_v46, %v2548_v46  ;;  %v1053_v28 = vadd.f32 %v1052_v24, %v1038_v21  ;;  %v1074_v29 = vadd.f32 %v2512_v33, %v1073_v25 }
 0x1a0   : > { %1736 = dma.vmem_to_hbm [thread:$0]  (%p2381_p10), %s2658_s29, 1024, %s2652_s15, %s2664_s24, %s2208_s6, %s2208_s6, %s2209_s27   ;;  %v1094_v30 = vmul.f32 %v2516_v35, %v2516_v35  ;;  %v1095_v31 = vmul.f32 %v2534_v42, %v2534_v42  ;;  %v1041_v34 = vmul.f32 %v2560_v52, %v2560_v52 }
 0x1a1   : > { %s2945_s18 = sld [smem:[#allocation32_spill]]  ;;  %s1167_s20 = sshll.u32 %s2529_s13, 4  ;;  %v1019_v32 = vadd.f32 %v1018_v26, %v2560_v52  ;;  %v1054_v36 = vadd.f32 %v1053_v28, %v1039_v23  ;;  %s2706_s20 = int_to_ptr.vmem [resolvable:$true] %s1167_s20 }
 0x1a2   : > { %s1142_s13 = scalar_lea.sflag [#allocation4], %s323_s19  ;;  %s2032_s10 = scalar_lea.vmem %s2706_s20, 1024 }
 0x1a3   : > { %p2033_p2 = scmp.ne.s32.totalorder %s2706_s20, %s2032_s10 }
 0x1a5   : > { %p2034_p13 = pnand %p2033_p2, %p2381_p10 }
 0x1a7   : > { %s2698_s1 = scalar_lea.hbm %s2945_s18, %s1531_s21  ;;  %p2035_p11 = pneg %p2034_p13 }
 0x1a8   : > { %s2210_s21 = smov [#allocation9]  }
 0x1a9   : > { %s2036_s15 = sshll.u32 %s2210_s21, 4  ;;  %s2037_s15 = int_to_ptr.vmem [resolvable:$false] %s2036_s15 }
 0x1aa   : > { %s2038_s29 = scalar_lea.vmem %s2037_s15, 2048  ;;  %p2039_p6 = scmp.lt.s32.totalorder %s2706_s20, %s2037_s15 }
 0x1ab   : > { %p2040_p7 = scmp.lt.s32.totalorder %s2038_s29, %s2032_s10 }
 0x1ad   : > { %p2041_p12 = por %p2040_p7, %p2039_p6 }
 0x1af   : > { %p2042_p0 = pnand %p2041_p12, %p2035_p11 }
 0x1b1   : > { %2045 = shalt.err (!%p2042_p0)
}
 0x1b2   : > { %s2046_s16 = scalar_lea.hbm %s2698_s1, 1024  ;;  %s2050_s8 = scalar_lea.hbm %s2945_s18, 4096 }
 0x1b3   : > { %p2047_p5 = scmp.ne.s32.totalorder %s2698_s1, %s2046_s16  ;;  %p2051_p3 = scmp.lt.s32.totalorder %s2698_s1, %s2945_s18 }
 0x1b4   : > { %p2052_p8 = scmp.lt.s32.totalorder %s2050_s8, %s2046_s16 }
 0x1b5   : > { %p2048_p1 = pnand %p2047_p5, %p2381_p10 }
 0x1b6   : > { %p2053_p2 = por %p2052_p8, %p2051_p3 }
 0x1b7   : > { %p2049_p4 = pneg %p2048_p1 }
 0x1b9   : > { %p2054_p13 = pnand %p2053_p2, %p2049_p4 }
 0x1bb   : > { %2057 = shalt.err (!%p2054_p13)
}
 0x1bc   : > { %1735 = dma.vmem_to_hbm [thread:$0]  (%p2381_p10), %s2706_s20, 1024, %s2698_s1, %s1142_s13, %s2208_s6, %s2208_s6, %s2209_s27   ;;  %v1075_v35 = vadd.f32 %v2522_v38, %v1074_v29  ;;  %v1096_v37 = vmul.f32 %v2512_v33, %v2512_v33  ;;  %v1020_v39 = vadd.f32 %v2542_v44, %v1019_v32  ;;  %v1042_v40 = vmul.f32 %v2542_v44, %v2542_v44 }
 0x1bd   : > { %v1055_v41 = vadd.f32 %v1054_v36, %v1040_v27  ;;  %v1097_v43 = vmul.f32 %v2522_v38, %v2522_v38  ;;  %v1110_v46 = vadd.f32 %v1095_v31, %v1094_v30  ;;  %v1043_v51 = vmul.f32 %v2552_v48, %v2552_v48  ;;  %s1494_s6 = sshll.u32 %s2940_s14, 7  ;;  %s1201_s27 = sshll.u32 %s2629_s22, 4  ;;  %s1202_s27 = int_to_ptr.vmem [resolvable:$true] %s1201_s27 }
 0x1be   : > { %v1076_v42 = vadd.f32 %v1075_v35, %v2550_v47  ;;  %v1021_v49 = vadd.f32 %v2552_v48, %v1020_v39  ;;  %v1098_v53 = vmul.f32 %v2550_v47, %v2550_v47  ;;  %v1044_v61 = vmul.f32 %v2576_v58, %v2576_v58  ;;  %s2947_s13 = sld [smem:[#allocation34_spill]]  ;;  %s2058_s15 = scalar_lea.vmem %s1202_s27, 128 }
 0x1bf   : > { %v1056_v52 = vadd.f32 %v1055_v41, %v1041_v34  ;;  %v1111_v55 = vadd.f32 %v1110_v46, %v1096_v37  ;;  %v1099_v1 = vmul.f32 %v2565_v54, %v2565_v54  ;;  %v1045_v9 = vmul.f32 %v2588_v0, %v2588_v0  ;;  %p2059_p10 = scmp.ne.s32.totalorder %s1202_s27, %s2058_s15  ;;  %s2211_s29 = smov [#allocation12]  }
 0x1c0   : > { %v1077_v33 = vadd.f32 %v1076_v42, %v2565_v54  ;;  %v1022_v44 = vadd.f32 %v1021_v49, %v2576_v58  ;;  %v1100_v13 = vmul.f32 %v2545_v45, %v2545_v45  ;;  %v1046_v16 = vmul.f32 %v2570_v56, %v2570_v56  ;;  %s2062_s16 = sshll.u32 %s2211_s29, 4  ;;  %s2063_s16 = int_to_ptr.vmem [resolvable:$false] %s2062_s16 }
 0x1c1   : > { %v1057_v63 = vadd.f32 %v1056_v52, %v1042_v40  ;;  %v1112_v3 = vadd.f32 %v1111_v55, %v1097_v43  ;;  %v1101_v18 = vmul.f32 %v2556_v50, %v2556_v50  ;;  %v1047_v20 = vmul.f32 %v2580_v60, %v2580_v60  ;;  %p2060_p11 = pnand %p2059_p10, %p2327_p9  ;;  %s2064_s19 = scalar_lea.vmem %s2063_s16, 256 }
 0x1c2   : > { %v1078_v38 = vadd.f32 %v2545_v45, %v1077_v33  ;;  %v1023_v48 = vadd.f32 %v1022_v44, %v2588_v0  ;;  %v1102_v22 = vmul.f32 %v2578_v59, %v2578_v59  ;;  %v1048_v24 = vmul.f32 %v2604_v6, %v2604_v6  ;;  %p2065_p7 = scmp.lt.s32.totalorder %s1202_s27, %s2063_s16  ;;  %p2066_p12 = scmp.lt.s32.totalorder %s2064_s19, %s2058_s15 }
 0x1c3   : > { %v1058_v11 = vadd.f32 %v1057_v63, %v1043_v51  ;;  %v1113_v15 = vadd.f32 %v1112_v3, %v1098_v53  ;;  %v1103_v26 = vmul.f32 %v2593_v2, %v2593_v2  ;;  %v1049_v28 = vmul.f32 %v2616_v12, %v2616_v12  ;;  %p2061_p6 = pneg %p2060_p11 }
 0x1c4   : > { %v1079_v47 = vadd.f32 %v2556_v50, %v1078_v38  ;;  %v1024_v58 = vadd.f32 %v2570_v56, %v1023_v48  ;;  %v1104_v30 = vmul.f32 %v2573_v57, %v2573_v57  ;;  %v1050_v32 = vmul.f32 %v2598_v4, %v2598_v4  ;;  %s1199_s10 = scalar_lea.hbm %s2947_s13, %s1494_s6  ;;  %p2067_p0 = por %p2066_p12, %p2065_p7 }
 0x1c5   : > { %v1059_v17 = vadd.f32 %v1058_v11, %v1044_v61  ;;  %v1114_v19 = vadd.f32 %v1113_v15, %v1099_v1  ;;  %v1105_v36 = vmul.f32 %v2584_v62, %v2584_v62  ;;  %v1051_v37 = vmul.f32 %v2608_v8, %v2608_v8 }
 0x1c6   : > { %v1080_v54 = vadd.f32 %v1079_v47, %v2578_v59  ;;  %v1025_v0 = vadd.f32 %v2580_v60, %v1024_v58  ;;  %v1106_v40 = vmul.f32 %v2606_v7, %v2606_v7  ;;  %v1109_v44 = vmul.f32 %v2612_v10, %v2612_v10  ;;  %p2068_p5 = pnand %p2067_p0, %p2061_p6 }
 0x1c7   : > { %v1060_v21 = vadd.f32 %v1059_v17, %v1045_v9  ;;  %v1115_v23 = vadd.f32 %v1114_v19, %v1100_v13  ;;  %vm1131_vm0 = vcmask 1040384   ;;  %vm1133_vm1 = vcmask 1041408  }
 0x1c8   : > { %v1081_v45 = vadd.f32 %v1080_v54, %v2593_v2  ;;  %v1026_v56 = vadd.f32 %v1025_v0, %v2604_v6  ;;  %vm1135_vm2 = vcmask 1042432   ;;  %vm1137_vm3 = vcmask 1043456  }
 0x1c9   : > { %v1061_v25 = vadd.f32 %v1060_v21, %v1046_v16  ;;  %v1116_v27 = vadd.f32 %v1115_v23, %v1101_v18 }
 0x1ca   : > { %v1082_v50 = vadd.f32 %v2573_v57, %v1081_v45  ;;  %v1027_v60 = vadd.f32 %v1026_v56, %v2616_v12 }
 0x1cb   : > { %v1062_v29 = vadd.f32 %v1061_v25, %v1047_v20  ;;  %v1117_v31 = vadd.f32 %v1116_v27, %v1102_v22  ;;  %v1014_v22 = vld [vmem:[%s2629_s22] sm:$0xff] }
 0x1cc   : > { %v1083_v59 = vadd.f32 %v2584_v62, %v1082_v50  ;;  %v1028_v6 = vadd.f32 %v2598_v4, %v1027_v60  ;;  %v1107_v62 = vmul.f32 %v2621_v14, %v2621_v14 }
 0x1cd   : > { %v1063_v34 = vadd.f32 %v1062_v29, %v1048_v24  ;;  %v1118_v35 = vadd.f32 %v1117_v31, %v1103_v26 }
 0x1ce   : > { %v1084_v2 = vadd.f32 %v1083_v59, %v2606_v7  ;;  %v1029_v12 = vadd.f32 %v2608_v8, %v1028_v6  ;;  %v1108_v8 = vmul.f32 %v2601_v5, %v2601_v5 }
 0x1cf   : > { %v1064_v39 = vadd.f32 %v1063_v34, %v1049_v28  ;;  %v1119_v41 = vadd.f32 %v1118_v35, %v1104_v30 }
 0x1d0   : > { %v1085_v57 = vadd.f32 %v1084_v2, %v2621_v14  ;;  %v1030_v4 = vrot.slane %v1029_v12, 4 }
 0x1d1   : > { %v1065_v42 = vadd.f32 %v1064_v39, %v1050_v32  ;;  %v1120_v46 = vadd.f32 %v1119_v41, %v1105_v36 }
 0x1d2   : > { %v1086_v43 = vadd.f32 %v2601_v5, %v1085_v57  ;;  %v1031_v49 = vadd.f32 %v1030_v4, %v1029_v12 }
 0x1d3   : > { %v1066_v51 = vadd.f32 %v1065_v42, %v1051_v37  ;;  %v1121_v33 = vadd.f32 %v1120_v46, %v1106_v40 }
 0x1d4   : > { %v1087_v52 = vadd.f32 %v2612_v10, %v1086_v43  ;;  %v1032_v53 = vrot.slane %v1031_v49, 2 }
 0x1d5   : > { %v1067_v55 = vrot.slane %v1066_v51, 4  ;;  %v1122_v61 = vadd.f32 %v1121_v33, %v1107_v62 }
 0x1d6   : > { %v1088_v7 = vrot.slane %v1087_v52, 4  ;;  %v1033_v63 = vadd.f32 %v1032_v53, %v1031_v49 }
 0x1d7   : > { %v1068_v38 = vadd.f32 %v1067_v55, %v1066_v51  ;;  %v1123_v14 = vadd.f32 %v1122_v61, %v1108_v8 }
 0x1d8   : > { %v1089_v1 = vadd.f32 %v1088_v7, %v1087_v52  ;;  %v1034_v48 = vrot.slane %v1033_v63, 1 }
 0x1d9   : > { %v1069_v3 = vrot.slane %v1068_v38, 2  ;;  %v1124_v11 = vadd.f32 %v1123_v14, %v1109_v44 }
 0x1da   : > { %v1090_v9 = vrot.slane %v1089_v1, 2  ;;  %v1035_v58 = vadd.f32 %v1034_v48, %v1033_v63 }
 0x1db   : > { %v1070_v47 = vadd.f32 %v1069_v3, %v1068_v38  ;;  %v1125_v15 = vrot.slane %v1124_v11, 4 }
 0x1dc   : > { %v1091_v13 = vadd.f32 %v1090_v9, %v1089_v1 }
 0x1dd   : > { %v1071_v5 = vrot.slane %v1070_v47, 1  ;;  %v1126_v17 = vadd.f32 %v1125_v15, %v1124_v11 }
 0x1de   : > { %v1092_v16 = vrot.slane %v1091_v13, 1 }
 0x1df   : > { %v1072_v10 = vadd.f32 %v1071_v5, %v1070_v47  ;;  %v1127_v54 = vrot.slane %v1126_v17, 2 }
 0x1e0   : > { %v1093_v18 = vadd.f32 %v1092_v16, %v1091_v13 }
 0x1e1   : > { %v1128_v19 = vadd.f32 %v1127_v54, %v1126_v17  ;;  %v1132_v0 = vsel %vm1131_vm0, %v1035_v58, %v1072_v10 }
 0x1e2   : > { %v1134_v21 = vsel %vm1133_vm1, %v1132_v0, %v1093_v18 }
 0x1e3   : > { %v1129_v20 = vrot.slane %v1128_v19, 1 }
 0x1e5   : > { %v1130_v45 = vadd.f32 %v1129_v20, %v1128_v19 }
 0x1e7   : > { %v1136_v23 = vsel %vm1135_vm2, %v1134_v21, %v1130_v45 }
 0x1e8   : > { %v1138_v56 = vsel %vm1137_vm3, %v1136_v23, 0.0 }
 0x1e9   : > { %v1139_v24 = vadd.f32 %v1138_v56, %v1014_v22 }
 0x1eb   : > { %1140 = vst [vmem:[%s2629_s22] sm:$0xff] %v1139_v24 }
 0x1ec   : > { %2071 = shalt.err (!%p2068_p5)
}
 0x1ed   : > { %s2072_s14 = scalar_lea.hbm %s1199_s10, 128  ;;  %s2076_s8 = scalar_lea.hbm %s2947_s13, 256 }
 0x1ee   : > { %p2073_p1 = scmp.ne.s32.totalorder %s1199_s10, %s2072_s14  ;;  %p2077_p8 = scmp.lt.s32.totalorder %s1199_s10, %s2947_s13 }
 0x1ef   : > { %p2078_p2 = scmp.lt.s32.totalorder %s2076_s8, %s2072_s14 }
 0x1f0   : > { %p2074_p4 = pnand %p2073_p1, %p2327_p9 }
 0x1f1   : > { %p2079_p13 = por %p2078_p2, %p2077_p8 }
 0x1f2   : > { %p2075_p3 = pneg %p2074_p4 }
 0x1f4   : > { %p2080_p10 = pnand %p2079_p13, %p2075_p3 }
 0x1f6   : > { %2083 = shalt.err (!%p2080_p10)
}
 0x1f7   : > { %1737 = dma.vmem_to_hbm [thread:$0]  (%p2327_p9), %s1202_s27, 128, %s1199_s10, %s2664_s24  }
 0x1f8 PF: > { %s2948_s6 = sld [smem:[#allocation21_spill]]  ;;  %p1770_p11 = scmp.ge.s32.totalorder %s2198_s7, 2 }
 0x1f9   : > { %s2949_s1 = sld [smem:[#allocation27_spill]] }
 0x1fe   : > { %s1213_s20 = sand.u32 1, %s2948_s6  }
 0x1ff   : > { %p2950_p6 = scmp.ne.s32.totalorder %s2949_s1, 0  ;;  %s1214_s15 = scalar_lea.sflag [#allocation4], %s1213_s20 }
 0x201   : > { %p1756_p7 = pnand %p1770_p11, %p2950_p6 }
 0x203   : > { %p1757_p12 = pneg %p1756_p7 }
 0x205   : > { %2145 = dma.done.wait (%p1757_p12), %s1214_s15, 1024  }
 0x206   : > { %2147 = vsyncadd (%p1757_p12), %s1214_s15, 4294966272  ;;  %s2951_s29 = sadd.s32 4294967294, %s2198_s7  }
 0x207   : > { %s1222_s16 = sand.u32 1, %s2951_s29  }
 0x208   : > { %s1223_s19 = scalar_lea.sflag [#allocation11], %s1222_s16 }
 0x209   : > { %2149 = dma.done.wait (%p1757_p12), %s1223_s19, 1024  }
 0x20a   : > { %2151 = vsyncadd (%p1757_p12), %s1223_s19, 4294966272  ;;  %s2952_s28 = sld [smem:[#allocation29_spill]] }
 0x210   : > { %p2953_p9 = scmp.ne.s32.totalorder %s2952_s28, 0 }
 0x212   : > { %p1762_p0 = pnand %p1770_p11, %p2953_p9 }
 0x214   : > { %p1763_p5 = pneg %p1762_p0 }
 0x216   : > { %2153 = dma.done.wait (%p1763_p5), %s1223_s19, 128  }
 0x217   : > { %2155 = vsyncadd (%p1763_p5), %s1223_s19, 4294967168  ;;  %s27_s7 = sadd.s32 1, %s2198_s7   ;;  %s2954_s21 = sld [smem:[#allocation20_spill]] }
 0x218   : > { %p24_p1 = scmp.ge.s32.totalorder %s27_s7, 6   ;;  %s2955_s24 = sld [smem:[#allocation22_spill]] }
 0x219   : > { %s2956_s27 = sld [smem:[#allocation25_spill]]  ;;  %s2957_s22 = smov %s2166_s23 }
 0x21a   : > { %s2958_s23 = smov %s2397_s4  ;;  %s2959_s25 = smov %s2178_s26 }
 0x21b   : > { %s2960_s26 = smov %s2400_s5  ;;  %s2961_s28 = smov %s2194_s30 }
 0x21c   : > { %s2962_s29 = smov %s2965_s9  ;;  %s2963_s30 = smov %s2969_s11 }
 0x21d   :  { %26 = sbr.rel (!%p24_p1) target bundleno = 17 (0x11), region = 136 }
 0x222   :  { %1237 = vsyncpa [#allocation3], 1 }
 0x223   :  { %1239 = vsyncpa [#allocation3 + $0x1], 1 }
 0x224   :  { %1240 = vsyncpa [#allocation6], 1 }
 0x225   :  { %1241 = vsyncpa [#allocation4], 1 }
 0x226   :  { %1243 = vsyncpa [#allocation4 + $0x1], 1 }
 0x227   :  { %1244 = vsyncpa [#allocation11], 1 }
 0x228   :  { %1246 = vsyncpa [#allocation11 + $0x1], 1 }

</bundles_post_ra>
